<compile_context>
chip_gen: v7x
topology: tpu7x:2x2x1
jax: 0.10.0
libtpu: 0.0.40
codegen_flags: <defaults>
</compile_context>

<pallas_src>
import functools

import jax
import jax.numpy as jnp
from jax import lax
from jax.experimental import pallas as pl
from jax.experimental.pallas import tpu as pltpu


def _round_up(x: int, m: int) -> int:
    return ((x + m - 1) // m) * m


def _linear_kernel(x_ref, w_ref, b_ref, o_ref, *, precision):
    # x_ref: (TM, D_in), w_ref: (D_out, D_in), b_ref: (1, D_out), o_ref: (TM, D_out)
    acc = lax.dot_general(
        x_ref[...],
        w_ref[...],
        dimension_numbers=(((1,), (1,)), ((), ())),  # x @ w.T without a transpose
        preferred_element_type=jnp.float32,
        precision=precision,
    )
    o_ref[...] = (acc + b_ref[...].astype(jnp.float32)).astype(o_ref.dtype)


def _choose_tile_m(n: int, d_in: int, d_out: int, itemsize: int,
                   vmem_budget_bytes: int) -> int:
    """Largest batch tile (multiple of 8) whose double-buffered x/out tiles plus
    the resident weight + bias fit inside the VMEM budget (budget chosen to be
    safe on v7x's 64 MiB VMEM; v5e/v6e have 128 MiB so it always fits there)."""
    n8 = _round_up(max(n, 1), 8)
    resident = (d_out * d_in + d_out) * itemsize  # weight + bias, single-buffered
    for tm in (1024, 512, 256, 128, 64, 32, 16, 8):
        if tm > n8:
            continue
        tiles = 2 * tm * (d_in + d_out) * itemsize  # double-buffered x and out
        if resident + tiles <= vmem_budget_bytes:
            return tm
    return 8


def naive_linear_forward(inputs, weight, bias,
                         precision=lax.Precision.HIGHEST):
    """Pallas-backed equivalent of NaiveLinear.forward.

    Args:
      inputs: (N, D_in) float array.
      weight: (D_out, D_in) float array (torch layout: out_features x in_features).
      bias:   (D_out,) float array.
      precision: matmul precision for the in-kernel contraction.
    Returns:
      (outputs, logabsdet): outputs (N, D_out) in inputs.dtype, logabsdet (N,) float32.
    """
    n, d_in = inputs.shape
    d_out = weight.shape[0]
    itemsize = jnp.dtype(inputs.dtype).itemsize

    # --- tiling over the batch axis -----------------------------------------
    vmem_budget = 40 * 1024 * 1024  # leave headroom under v7x's 64 MiB VMEM
    tm = _choose_tile_m(n, d_in, d_out, itemsize, vmem_budget)
    n_pad = _round_up(n, tm)
    x = inputs
    if n_pad != n:
        x = jnp.pad(inputs, ((0, n_pad - n), (0, 0)))
    grid = (n_pad // tm,)

    bias2d = bias.reshape(1, d_out)

    # Raise the scoped VMEM limit above the 16/32 MiB defaults when needed.
    resident_bytes = (d_out * d_in + d_out) * itemsize
    tile_bytes = 2 * tm * (d_in + d_out) * itemsize
    vmem_limit = min(48 * 1024 * 1024,
                     max(32 * 1024 * 1024, resident_bytes + tile_bytes + (4 << 20)))

    cost = pl.CostEstimate(
        flops=2 * n_pad * d_in * d_out,
        transcendentals=0,
        bytes_accessed=itemsize * (n_pad * d_in + d_in * d_out + d_out + n_pad * d_out),
    )

    # TODO(synk): for lane-dense stores, production use should pad D_out to a
    # multiple of 128; the D=32 toy case below is overhead-dominated anyway.
    outputs = pl.pallas_call(
        functools.partial(_linear_kernel, precision=precision),
        out_shape=jax.ShapeDtypeStruct((n_pad, d_out), inputs.dtype),
        grid_spec=pltpu.PrefetchScalarGridSpec(
            num_scalar_prefetch=0,
            grid=grid,
            in_specs=[
                # x: one (tm, D_in) tile per grid step -> double-buffered.
                pl.BlockSpec((tm, d_in), lambda i: (i, 0)),
                # weight / bias: constant block index -> resident in VMEM.
                pl.BlockSpec((d_out, d_in), lambda i: (0, 0)),
                pl.BlockSpec((1, d_out), lambda i: (0, 0)),
            ],
            out_specs=pl.BlockSpec((tm, d_out), lambda i: (i, 0)),
        ),
        compiler_params=pltpu.CompilerParams(
            # Batch tiles are independent: shard across TCs on v7x megacore.
            dimension_semantics=("parallel",),
            vmem_limit_bytes=int(vmem_limit),
        ),
        cost_estimate=cost,
    )(x, weight, bias2d)

    if n_pad != n:
        outputs = outputs[:n]

    # TODO(synk): slogdet (LU with pivoting) has no clean Pallas TPU equivalent;
    # computed in plain JAX on the DxD weight.  Returned in float32 so the
    # log-determinant is not truncated when inputs are bf16.
    _, logabsdet_scalar = jnp.linalg.slogdet(weight.astype(jnp.float32))
    logabsdet = logabsdet_scalar * jnp.ones((n,), dtype=jnp.float32)
    return outputs, logabsdet


def init_params(key, features):
    """Matches NaiveLinear.__init__: bias=zeros, weight~U(-1/sqrt(8), 1/sqrt(8))."""
    stdv = 1.0 / jnp.sqrt(8.0)
    weight = jax.random.uniform(
        key, (features, features), dtype=jnp.float32, minval=-stdv, maxval=stdv
    )
    bias = jnp.zeros((features,), dtype=jnp.float32)
    return weight, bias


if __name__ == "__main__":
    key = jax.random.PRNGKey(0)
    k_w, k_x = jax.random.split(key)

    batch = 8
    features = 32

    weight, bias = init_params(k_w, features)
    x = jax.random.normal(k_x, (batch, features), dtype=jnp.float32)

    outputs, logabsdet = naive_linear_forward(x, weight, bias)
    outputs, logabsdet = jax.block_until_ready((outputs, logabsdet))

    # Sanity check against a plain-JAX reference at matching precision.
    ref_out = jnp.dot(x, weight.T, precision=lax.Precision.HIGHEST) + bias
    ref_lad = jnp.linalg.slogdet(weight)[1] * jnp.ones((batch,), jnp.float32)
    assert outputs.shape == (batch, features)
    assert logabsdet.shape == (batch,)
    assert jnp.allclose(outputs, ref_out, atol=1e-5, rtol=1e-5)
    assert jnp.allclose(logabsdet, ref_lad, atol=1e-5, rtol=1e-5)

    print("KERNEL_OK")
</pallas_src>

<mosaic_0001>
module attributes {stable_mosaic.version = 11 : i64} {
  func.func @_linear_kernel(%arg0: i32, %arg1: memref<8x32xf32, #tpu.memory_space<vmem>>, %arg2: memref<32x32xf32, #tpu.memory_space<vmem>>, %arg3: memref<1x32xf32, #tpu.memory_space<vmem>>, %arg4: memref<8x32xf32, #tpu.memory_space<vmem>>) attributes {dimension_semantics = [#tpu.dimension_semantics<parallel>], iteration_bounds = array<i64: 1>, scalar_prefetch = 0 : i64, scratch_operands = 0 : i64, tpu.core_type = #tpu.core_type<tc>, window_params = [{transform_indices = @transform_0, window_bounds = array<i64: 8, 32>}, {pipeline_mode = #tpu.pipeline_mode<synchronous>, transform_indices = @transform_1, window_bounds = array<i64: 32, 32>}, {pipeline_mode = #tpu.pipeline_mode<synchronous>, transform_indices = @transform_2, window_bounds = array<i64: 1, 32>}, {transform_indices = @transform_3, window_bounds = array<i64: 8, 32>}]} {
    %c0 = arith.constant 0 : index
    %c0_0 = arith.constant 0 : index
    %0 = vector.load %arg1[%c0, %c0_0] : memref<8x32xf32, #tpu.memory_space<vmem>>, vector<8x32xf32>
    %c0_1 = arith.constant 0 : index
    %c0_2 = arith.constant 0 : index
    %1 = vector.load %arg2[%c0_1, %c0_2] : memref<32x32xf32, #tpu.memory_space<vmem>>, vector<32x32xf32>
    %cst = arith.constant dense<0.000000e+00> : vector<8x32xf32>
    %2 = tpu.matmul %0, %1, %cst {dimension_numbers = #tpu.dot_dimension_numbers<[1], [1], [0], [0], [0, 0, 1, 0], [], []>, precision = #tpu.contract_precision<fp32>} : vector<8x32xf32>, vector<32x32xf32>, vector<8x32xf32> -> vector<8x32xf32>
    %c0_3 = arith.constant 0 : index
    %c0_4 = arith.constant 0 : index
    %3 = vector.load %arg3[%c0_3, %c0_4] : memref<1x32xf32, #tpu.memory_space<vmem>>, vector<1x32xf32>
    %4 = vector.broadcast %3 : vector<1x32xf32> to vector<8x32xf32>
    %5 = arith.addf %2, %4 : vector<8x32xf32>
    %c0_5 = arith.constant 0 : index
    %c0_6 = arith.constant 0 : index
    %6 = vector.load %arg4[%c0_5, %c0_6] : memref<8x32xf32, #tpu.memory_space<vmem>>, vector<8x32xf32>
    tpu.vector_store %arg4[%c0_5, %c0_6], %5 {strides = array<i32>} : memref<8x32xf32, #tpu.memory_space<vmem>>, vector<8x32xf32>,
    return
  }
  func.func @transform_0(%arg0: i32) -> (i32, i32) {
    %c0_i32 = arith.constant 0 : i32
    %c0_i32_0 = arith.constant 0 : i32
    return %arg0, %c0_i32 : i32, i32
  }
  func.func @transform_1(%arg0: i32) -> (i32, i32) {
    %c0_i32 = arith.constant 0 : i32
    %c0_i32_0 = arith.constant 0 : i32
    %c0_i32_1 = arith.constant 0 : i32
    return %c0_i32, %c0_i32_0 : i32, i32
  }
  func.func @transform_2(%arg0: i32) -> (i32, i32) {
    %c0_i32 = arith.constant 0 : i32
    %c0_i32_0 = arith.constant 0 : i32
    %c0_i32_1 = arith.constant 0 : i32
    return %c0_i32, %c0_i32_0 : i32, i32
  }
  func.func @transform_3(%arg0: i32) -> (i32, i32) {
    %c0_i32 = arith.constant 0 : i32
    %c0_i32_0 = arith.constant 0 : i32
    return %arg0, %c0_i32 : i32, i32
  }
}

</mosaic_0001>

<bundles_post_ra>
// kernel: tpu_custom_call.1
= control target key start
LH: loop header
LB: loop body
LE: loop exit
PB: predicated region body
PF: predicated region fallthrough
CT: control target
= control target key end

     0   :  { %8 = vsyncpa [#allocation3], 0  ;;  %s898_s0 = inlined_call_operand.hbm [shape: f32[8,32], index: 0, kind: input, shape index: {}]   ;;  %s899_s1 = inlined_call_operand.hbm [shape: f32[32,32], index: 1, kind: input, shape index: {}]   ;;  %s900_s2 = inlined_call_operand.vmem [shape: f32[1,32], index: 2, kind: input, shape index: {}]   ;;  %s901_s3 = inlined_call_operand.hbm [shape: f32[8,32], index: 3, kind: output, shape index: {}]  }
   0x1   :  { %9 = vsyncpa [#allocation6], 0 }
   0x2   :  { %10 = vsyncpa [#allocation4], 0  ;;  %s794_s12 = smov [#allocation2]   ;;  %s795_s14 = smov [#allocation5]  }
   0x3   :  { %s17_s13 = sshll.u32 %s794_s12, 4  ;;  %s26_s15 = sshll.u32 %s795_s14, 4  ;;  %s18_s13 = int_to_ptr.vmem [resolvable:$true] %s17_s13  ;;  %s822_s15 = int_to_ptr.vmem [resolvable:$true] %s26_s15 }
   0x4   :  { %s722_s18 = scalar_lea.hbm %s898_s0, 128 }
   0x5   :  { %p723_p0 = scmp.ne.s32.totalorder %s898_s0, %s722_s18  ;;  %p726_p1 = scmp.lt.u32.totalorder %s722_s18, %s898_s0 }
   0x7   :  { %p728_p2 = pnand %p726_p1, %p723_p0 }
   0x9   :  { %731 = shalt.err (!%p728_p2)
}
   0xa   :  { %s732_s23 = scalar_lea.vmem %s18_s13, 128  ;;  %p737_p4 = scmp.lt.s32.totalorder %s18_s13, %s18_s13 }
   0xb   :  { %p733_p3 = scmp.ne.s32.totalorder %s18_s13, %s732_s23  ;;  %p738_p5 = scmp.lt.s32.totalorder %s732_s23, %s732_s23 }
   0xd   :  { %p739_p6 = por %p738_p5, %p737_p4 }
   0xf   :  { %p740_p7 = pnand %p739_p6, %p733_p3 }
  0x11   :  { %743 = shalt.err (!%p740_p7)
}
  0x12   :  { %20 = dma.hbm_to_vmem [thread:$0]  %s898_s0, 128, %s18_s13, [#allocation3]  }
  0x13   :  { %s744_s28 = scalar_lea.hbm %s899_s1, 512 }
  0x14   :  { %p745_p8 = scmp.ne.s32.totalorder %s899_s1, %s744_s28  ;;  %p748_p9 = scmp.lt.u32.totalorder %s744_s28, %s899_s1 }
  0x16   :  { %p750_p10 = pnand %p748_p9, %p745_p8 }
  0x18   :  { %753 = shalt.err (!%p750_p10)
}
  0x19   :  { %s754_s6 = scalar_lea.vmem %s822_s15, 512  ;;  %p759_p12 = scmp.lt.s32.totalorder %s822_s15, %s822_s15 }
  0x1a   :  { %p755_p11 = scmp.ne.s32.totalorder %s822_s15, %s754_s6  ;;  %p760_p13 = scmp.lt.s32.totalorder %s754_s6, %s754_s6 }
  0x1c   :  { %p761_p0 = por %p760_p13, %p759_p12 }
  0x1e   :  { %p762_p1 = pnand %p761_p0, %p755_p11 }
  0x20   :  { %765 = shalt.err (!%p762_p1)
}
  0x21   :  { %s796_s0 = smov 128   ;;  %s797_s7 = smov 8  }
  0x22   :  { %32 = dma.hbm_to_vmem [thread:$0]  %s899_s1, 512, %s822_s15, [#allocation6], %s796_s0, %s796_s0, %s797_s7  }
  0x23   :  { %788 = dma.done.wait [#allocation3], 128  }
  0x24   :  { %789 = vsyncadd [#allocation3], 4294967168 }
  0x25   :  { %790 = dma.done.wait [#allocation6], 512  }
  0x26   :  { %791 = vsyncadd [#allocation6], 4294966784  ;;  %v798_v0 = vmov 0.0|0.0   ;;  %vm799_vm0 = vmmov 0   ;;  %v800_v1 = vmov 0.0   ;;  %vm53_vm1 = vcmask 261120  }
  0x27   :  { %668 = vmatprep.subr.bf16.mxu1 %v798_v0  ;;  %686 = vmatprep.subr.bf16.mxu0 %v798_v0  ;;  %v42_v2 = vld [vmem:[#allocation5] sm:$0xff]  ;;  %v43_v3 = vld [vmem:[#allocation5 + $0x8] sm:$0xff]  ;;  %v44_v4 = vld [vmem:[#allocation5 + $0x10] sm:$0xff]  ;;  %s801_s11 = smov [#allocation7]  }
  0x28   :  { %610 = vmatprep.mubr.msk.f32.mxu1 %vm799_vm0, %v800_v1  ;;  %643 = vmatprep.mubr.msk.f32.mxu0 %vm799_vm0, %v800_v1  ;;  %v58_v5 = vsel %vm53_vm1, %v42_v2, 0  ;;  %v61_v6 = vsel %vm53_vm1, %v43_v3, 0  ;;  %v45_v7 = vld [vmem:[#allocation5 + $0x18] sm:$0xff]  ;;  %v64_v11 = vsel %vm53_vm1, %v44_v4, 0  ;;  %s561_s12 = sshll.u32 %s801_s11, 4  ;;  %s562_s12 = int_to_ptr.vmem [resolvable:$true] %s561_s12 }
  0x29   :  { %v41_v8 = vld [vmem:[#allocation2] sm:$0xff]  ;;  %v70_v9 = vand.u32 4294901760, %v58_v5  ;;  %v73_v10 = vand.u32 4294901760, %v61_v6  ;;  %v67_v12 = vsel %vm53_vm1, %v45_v7, 0  ;;  %v76_v18 = vand.u32 4294901760, %v64_v11  ;;  %s766_s13 = scalar_lea.vmem %s562_s12, 128  ;;  %p771_p3 = scmp.lt.s32.totalorder %s562_s12, %s562_s12 }
  0x2a   :  { %v55_v13 = vsel %vm53_vm1, %v41_v8, 0  ;;  %v79_v19 = vand.u32 4294901760, %v67_v12  ;;  %v571_v45 = vld [vmem:[%s900_s2] ss:$0 sm:$0xff]  ;;  %p767_p2 = scmp.ne.s32.totalorder %s562_s12, %s766_s13  ;;  %p772_p4 = scmp.lt.s32.totalorder %s766_s13, %s766_s13 }
  0x2b   :  { %v669_v14 = vpack.c.bf16 %v73_v10, %v70_v9  ;;  %v150_v15 = vsub.f32 %v58_v5, %v70_v9  ;;  %v157_v16 = vsub.f32 %v61_v6, %v73_v10  ;;  %v138_v17 = vand.u32 4294901760, %v55_v13 }
  0x2c   :  { %v164_v23 = vsub.f32 %v64_v11, %v76_v18  ;;  %v672_v25 = vpack.c.bf16 %v79_v19, %v76_v18  ;;  %v171_v26 = vsub.f32 %v67_v12, %v79_v19  ;;  %p773_p5 = por %p772_p4, %p771_p3 }
  0x2d   :  { %670 = vmatpush3.bf16.xpose.msra.mxu1 %v669_v14  ;;  %688 = vmatpush3.bf16.xpose.msra.mxu0 %v669_v14  ;;  %v151_v20 = vand.u32 4294901760, %v150_v15  ;;  %v158_v21 = vand.u32 4294901760, %v157_v16  ;;  %v139_v22 = vsub.f32 %v55_v13, %v138_v17  ;;  %v681_v43 = vpack.c.bf16 %v157_v16, %v150_v15 }
  0x2e   :  { %671 = vmatprep.subr.bf16.mxu1 %v798_v0  ;;  %689 = vmatprep.subr.bf16.mxu0 %v798_v0  ;;  %v165_v32 = vand.u32 4294901760, %v164_v23  ;;  %v172_v33 = vand.u32 4294901760, %v171_v26  ;;  %v684_v44 = vpack.c.bf16 %v171_v26, %v164_v23  ;;  %p774_p6 = pnand %p773_p5, %p767_p2 }
  0x2f   :  { %v140_v24 = vand.u32 4294901760, %v139_v22  ;;  %v152_v27 = vsub.f32 %v150_v15, %v151_v20  ;;  %v159_v28 = vsub.f32 %v157_v16, %v158_v21  ;;  %v693_v36 = vpack.c.bf16 %v158_v21, %v151_v20 }
  0x30   :  { %v166_v37 = vsub.f32 %v164_v23, %v165_v32  ;;  %v173_v38 = vsub.f32 %v171_v26, %v172_v33  ;;  %v696_v42 = vpack.c.bf16 %v172_v33, %v165_v32 }
  0x31   :  { %v141_v29 = vsub.f32 %v139_v22, %v140_v24  ;;  %v153_v30 = vand.u32 4294901760, %v152_v27  ;;  %v160_v31 = vand.u32 4294901760, %v159_v28 }
  0x32   :  { %v167_v39 = vand.u32 4294901760, %v166_v37  ;;  %v174_v40 = vand.u32 4294901760, %v173_v38 }
  0x33   :  { %v142_v34 = vand.u32 4294901760, %v141_v29  ;;  %v675_v35 = vpack.c.bf16 %v160_v31, %v153_v30 }
  0x34   :  { %v678_v41 = vpack.c.bf16 %v174_v40, %v167_v39 }
  0x35   :  { %673 = vmatpush3.bf16.xpose.msra.mxu1 %v672_v25  ;;  %691 = vmatpush3.bf16.xpose.msra.mxu0 %v672_v25 }
  0x36   :  { %674 = vmatprep.subr.bf16.mxu1 %v798_v0  ;;  %692 = vmatprep.subr.bf16.mxu0 %v798_v0 }
  0x3c   :  { %611 = vmatmul.mubr.f32.vlgmr.msra.gmra.mrb[0].mxu1 %v142_v34  ;;  %644 = vmatmul.mubr.f32.vlgmr.msra.gmra.mrb[0].mxu0 %v140_v24 }
  0x3d   :  { %676 = vmatpush3.bf16.xpose.msra.mxu1 %v675_v35  ;;  %694 = vmatpush3.bf16.xpose.msra.mxu0 %v693_v36 }
  0x3e   :  { %677 = vmatprep.subr.bf16.mxu1 %v798_v0  ;;  %695 = vmatprep.subr.bf16.mxu0 %v798_v0 }
  0x3f   :  { %621 = vmatprep.mubr.msk.f32.mxu1 %vm799_vm0, %v800_v1  ;;  %654 = vmatprep.mubr.msk.f32.mxu0 %vm799_vm0, %v800_v1 }
  0x45   :  { %679 = vmatpush3.bf16.xpose.msra.mxu1 %v678_v41  ;;  %697 = vmatpush3.bf16.xpose.msra.mxu0 %v696_v42 }
  0x46   :  { %680 = vmatprep.subr.bf16.mxu1 %v798_v0  ;;  %698 = vmatprep.subr.bf16.mxu0 %v798_v0 }
  0x4c   :  { %622 = vmatmul.mubr.f32.vlgmr.msra.gmra.mrb[0].mxu1 %v138_v17  ;;  %655 = vmatmul.mubr.f32.vlgmr.msra.gmra.mrb[0].mxu0 %v138_v17 }
  0x4d   :  { %682 = vmatpush3.bf16.xpose.msra.mxu1 %v681_v43  ;;  %700 = vmatpush3.bf16.xpose.msra.mxu0 %v669_v14 }
  0x4e   :  { %683 = vmatprep.subr.bf16.mxu1 %v798_v0  ;;  %701 = vmatprep.subr.bf16.mxu0 %v798_v0 }
  0x4f   :  { %632 = vmatprep.mubr.msk.f32.mxu1 %vm799_vm0, %v800_v1  ;;  %665 = vmatprep.mubr.msk.f32.mxu0 %vm799_vm0, %v800_v1 }
  0x55   :  { %685 = vmatpush3.bf16.xpose.msra.mxu1 %v684_v44  ;;  %703 = vmatpush3.bf16.xpose.msra.mxu0 %v672_v25 }
  0x5c   :  { %633 = vmatmul.mubr.f32.vlgmr.msra.gmra.mrb[0].mxu1 %v139_v22  ;;  %666 = vmatmul.mubr.f32.vlgmr.msra.gmra.mrb[0].mxu0 %v138_v17 }
 0x12f   :  { %v315_v46 = vpop.f32.mrb[0].mxu1  ;;  %v550_v47 = vpop.f32.mrb[0].mxu0 }
 0x130   :  { %v704_v48 = vadd.f32 %v571_v45, %v315_v46  ;;  %v634_v49 = vpop.f32.mrb[1].mxu1  ;;  %v667_v50 = vpop.f32.mrb[1].mxu0 }
 0x132   :  { %v705_v51 = vadd.f32 %v704_v48, %v550_v47 }
 0x134   :  { %554 = vst.msk [vmem:[#allocation7] sm:$0xff] %vm53_vm1, %v705_v51 }
 0x135   :  { %777 = shalt.err (!%p774_p6)
}
 0x136   :  { %s778_s15 = scalar_lea.hbm %s901_s3, 128 }
 0x137   :  { %p779_p7 = scmp.ne.s32.totalorder %s901_s3, %s778_s15  ;;  %p782_p8 = scmp.lt.u32.totalorder %s778_s15, %s901_s3 }
 0x139   :  { %p784_p9 = pnand %p782_p8, %p779_p7 }
 0x13b   :  { %787 = shalt.err (!%p784_p9)
}
 0x13c   :  { %564 = dma.vmem_to_hbm [thread:$0]  %s562_s12, 128, %s901_s3, [#allocation4]  }
 0x13d   :  { %792 = dma.done.wait [#allocation4], 128  }
 0x13e   :  { %793 = vsyncadd [#allocation4], 4294967168 }
 0x13f   :  { %568 = vsyncpa [#allocation3], 1 }
 0x140   :  { %569 = vsyncpa [#allocation6], 1 }
 0x141   :  { %570 = vsyncpa [#allocation4], 1 }

</bundles_post_ra>
